<compile_context>
chip_gen: v7x
topology: tpu7x:2x2x1
jax: 0.10.0
libtpu: 0.0.40
codegen_flags: <defaults>
</compile_context>

<pallas_src>
import functools

import jax
import jax.numpy as jnp
from jax import lax
from jax.experimental import pallas as pl
from jax.experimental.pallas import tpu as pltpu

_LOG_2PI = 1.8378770664093453  # log(2*pi)


def _log_weight_kernel(prev_ref, curr_ref, At_ref, b_ref, w_ref, out_ref):
    # prev_ref / curr_ref : (TR, L)    packed particle tile, L = pack*Dx lanes
    # At_ref              : (L, L)     block-diagonal kron(I_pack, A.T) (grid-resident)
    # b_ref               : (1, L)     bias tiled `pack` times along lanes
    # w_ref               : (pack, L)  block-diagonal kron(I_pack, -0.5*exp(-log_var))
    # out_ref             : (pack, TR) lane-dense quadratic log-weight terms
    prev = prev_ref[...]
    curr = curr_ref[...]

    # mean = prev @ A.T + b applied independently per packed Dx-chunk via the
    # block-diagonal At.  Standard (M,K)x(K,N) MXU orientation.
    mean = jnp.dot(prev, At_ref[...],
                   preferred_element_type=jnp.float32) + b_ref[...]
    diff = curr - mean
    quad = diff * diff                                    # (TR, L)  VPU, lane-dense

    # out[c, r] = sum_d  -0.5 * inv_var[d] * diff[r, c*Dx + d]^2
    # q@k.T-style contraction over the shared minor axis (no XLU transpose),
    # producing the lane-dense (pack, TR) row directly.
    out_ref[...] = lax.dot_general(
        w_ref[...], quad,
        dimension_numbers=(((1,), (1,)), ((), ())),
        preferred_element_type=jnp.float32)


def _round_up(x, m):
    return (x + m - 1) // m * m


def _tensorcores_per_device():
    """Best-effort: TensorCores per JAX device (v4/v5p megacore, v7x -> 2)."""
    try:
        d = jax.devices()[0]
        if d.platform != "tpu":
            return 1
        nc = getattr(d, "num_cores", None)
        if nc:
            return max(int(nc), 1)
        kind = str(getattr(d, "device_kind", "")).lower()
        if any(tag in kind for tag in ("v4", "v5p", "v7")):
            return 2
    except Exception:
        pass
    return 1


@functools.partial(jax.jit, static_argnames=("tile_m",))
def dynamics_log_weight(prev, curr, A, b, log_var, *, tile_m=8192):
    """log_weight(prev, curr) for linear-Gaussian dynamics.

    prev, curr : (N, Dx) float32
    A          : (Dx, Dx) float32
    b, log_var : (Dx,) float32
    returns    : (N,) float32 per-particle log weights
    """
    N, Dx = prev.shape
    assert curr.shape == (N, Dx)

    prev = prev.astype(jnp.float32)
    curr = curr.astype(jnp.float32)
    A = A.astype(jnp.float32)
    b = b.astype(jnp.float32)
    log_var = log_var.astype(jnp.float32)

    # --- pack several particles per 128-lane row (no-copy row-major reshape) ---
    pack = 1
    for p in (4, 2):
        if p * Dx <= 128 and N % p == 0:
            pack = p
            break
    L = pack * Dx
    rows = N // pack
    prev_p = prev.reshape(rows, L)
    curr_p = curr.reshape(rows, L)

    # --- tile selection: big tiles (mem-bound regime), no padding, megacore-aware ---
    max_rows = max(128, (max(tile_m, 512) // pack) // 128 * 128)
    if rows <= max_rows:
        block_rows = rows
        n_tiles = 1
        # Only split a single tile when >1 TensorCore can use the extra grid step.
        if _tensorcores_per_device() >= 2 and rows > 128:
            block_rows = _round_up(pl.cdiv(rows, 2), 128)
            n_tiles = pl.cdiv(rows, block_rows)
    else:
        block_rows = max_rows
        n_tiles = pl.cdiv(rows, block_rows)   # ragged last block handled by Pallas

    # --- parameter prep hoisted out of the kernel (computed once by XLA) ---
    eye = jnp.eye(pack, dtype=jnp.float32)
    At_p = jnp.kron(eye, A.T)                                          # (L, L)
    b_p = jnp.tile(b.reshape(1, Dx), (1, pack))                        # (1, L)
    w_p = jnp.kron(eye, (-0.5 * jnp.exp(-log_var)).reshape(1, Dx))     # (pack, L)

    out = pl.pallas_call(
        _log_weight_kernel,
        out_shape=jax.ShapeDtypeStruct((pack, rows), jnp.float32),
        grid=(n_tiles,),
        in_specs=[
            pl.BlockSpec((block_rows, L), lambda i: (i, 0)),   # prev tile
            pl.BlockSpec((block_rows, L), lambda i: (i, 0)),   # curr tile
            pl.BlockSpec((L, L), lambda i: (0, 0)),            # kron(I, A.T), resident
            pl.BlockSpec((1, L), lambda i: (0, 0)),            # bias
            pl.BlockSpec((pack, L), lambda i: (0, 0)),         # -0.5*inv_var blocks
        ],
        out_specs=pl.BlockSpec((pack, block_rows), lambda i: (0, i)),
        compiler_params=pltpu.CompilerParams(
            dimension_semantics=("parallel",),
        ),
    )(prev_p, curr_p, At_p, b_p, w_p)

    # Un-interleave packed particles + add the Gaussian constant (fused by XLA).
    c = -0.5 * (jnp.sum(log_var) + Dx * _LOG_2PI)
    return jnp.transpose(out).reshape(N) + c


def _reference_log_weight(prev, curr, A, b, log_var):
    mean = prev @ A.T + b[None, :]
    diff = curr - mean
    ll = -0.5 * (diff * diff * jnp.exp(-log_var)[None, :]
                 + log_var[None, :] + _LOG_2PI)
    return jnp.sum(ll, axis=-1)


if __name__ == "__main__":
    key = jax.random.PRNGKey(0)
    k_prev, k_curr, k_A, k_b, k_lv = jax.random.split(key, 5)

    Dx = 32    # latent state dimension

    # Deterministic synthetic parameters (stable-ish linear dynamics).
    A = 0.1 * jax.random.normal(k_A, (Dx, Dx), dtype=jnp.float32) \
        + 0.9 * jnp.eye(Dx, dtype=jnp.float32)
    b = 0.01 * jax.random.normal(k_b, (Dx,), dtype=jnp.float32)
    log_var = -1.0 + 0.1 * jax.random.normal(k_lv, (Dx,), dtype=jnp.float32)

    # Cases: single big tile, multi-tile with ragged last block (pack=4),
    # and odd N (pack=1 fallback) with ragged last block.
    for N, tile_m in ((1024, 8192), (1000, 512), (531, 512)):
        kp, kc = jax.random.split(jax.random.fold_in(k_prev, N))
        prev = jax.random.normal(kp, (N, Dx), dtype=jnp.float32)
        curr = jax.random.normal(kc, (N, Dx), dtype=jnp.float32)

        log_w = dynamics_log_weight(prev, curr, A, b, log_var, tile_m=tile_m)
        log_w = jax.block_until_ready(log_w)

        ref = _reference_log_weight(prev, curr, A, b, log_var)
        assert log_w.shape == (N,)
        assert jnp.allclose(log_w, ref, rtol=1e-5, atol=5e-4), \
            f"mismatch vs reference at N={N}, tile_m={tile_m}"

    print("KERNEL_OK")
</pallas_src>

<mosaic_0001>
module attributes {stable_mosaic.version = 11 : i64} {
  func.func @_log_weight_kernel(%arg0: i32, %arg1: memref<256x128xf32, #tpu.memory_space<vmem>>, %arg2: memref<256x128xf32, #tpu.memory_space<vmem>>, %arg3: memref<128x128xf32, #tpu.memory_space<vmem>>, %arg4: memref<1x128xf32, #tpu.memory_space<vmem>>, %arg5: memref<4x128xf32, #tpu.memory_space<vmem>>, %arg6: memref<4x256xf32, #tpu.memory_space<vmem>>) attributes {dimension_semantics = [#tpu.dimension_semantics<parallel>], iteration_bounds = array<i64: 1>, scalar_prefetch = 0 : i64, scratch_operands = 0 : i64, tpu.core_type = #tpu.core_type<tc>, window_params = [{transform_indices = @transform_0, window_bounds = array<i64: 256, 128>}, {transform_indices = @transform_1, window_bounds = array<i64: 256, 128>}, {pipeline_mode = #tpu.pipeline_mode<synchronous>, transform_indices = @transform_2, window_bounds = array<i64: 128, 128>}, {pipeline_mode = #tpu.pipeline_mode<synchronous>, transform_indices = @transform_3, window_bounds = array<i64: 1, 128>}, {pipeline_mode = #tpu.pipeline_mode<synchronous>, transform_indices = @transform_4, window_bounds = array<i64: 4, 128>}, {transform_indices = @transform_5, window_bounds = array<i64: 4, 256>}]} {
    %c0 = arith.constant 0 : index
    %c0_0 = arith.constant 0 : index
    %0 = vector.load %arg1[%c0, %c0_0] : memref<256x128xf32, #tpu.memory_space<vmem>>, vector<256x128xf32>
    %c0_1 = arith.constant 0 : index
    %c0_2 = arith.constant 0 : index
    %1 = vector.load %arg2[%c0_1, %c0_2] : memref<256x128xf32, #tpu.memory_space<vmem>>, vector<256x128xf32>
    %c0_3 = arith.constant 0 : index
    %c0_4 = arith.constant 0 : index
    %2 = vector.load %arg3[%c0_3, %c0_4] : memref<128x128xf32, #tpu.memory_space<vmem>>, vector<128x128xf32>
    %cst = arith.constant dense<0.000000e+00> : vector<256x128xf32>
    %3 = tpu.matmul %0, %2, %cst {dimension_numbers = #tpu.dot_dimension_numbers<[1], [0], [0], [1], [0, 0, 1, 1], [], []>} : vector<256x128xf32>, vector<128x128xf32>, vector<256x128xf32> -> vector<256x128xf32>
    %c0_5 = arith.constant 0 : index
    %c0_6 = arith.constant 0 : index
    %4 = vector.load %arg4[%c0_5, %c0_6] : memref<1x128xf32, #tpu.memory_space<vmem>>, vector<1x128xf32>
    %5 = vector.broadcast %4 : vector<1x128xf32> to vector<256x128xf32>
    %6 = arith.addf %3, %5 : vector<256x128xf32>
    %7 = arith.subf %1, %6 : vector<256x128xf32>
    %8 = arith.mulf %7, %7 : vector<256x128xf32>
    %c0_7 = arith.constant 0 : index
    %c0_8 = arith.constant 0 : index
    %9 = vector.load %arg5[%c0_7, %c0_8] : memref<4x128xf32, #tpu.memory_space<vmem>>, vector<4x128xf32>
    %cst_9 = arith.constant dense<0.000000e+00> : vector<4x256xf32>
    %10 = tpu.matmul %9, %8, %cst_9 {dimension_numbers = #tpu.dot_dimension_numbers<[1], [1], [0], [0], [0, 0, 1, 0], [], []>} : vector<4x128xf32>, vector<256x128xf32>, vector<4x256xf32> -> vector<4x256xf32>
    %c0_10 = arith.constant 0 : index
    %c0_11 = arith.constant 0 : index
    %11 = vector.load %arg6[%c0_10, %c0_11] : memref<4x256xf32, #tpu.memory_space<vmem>>, vector<4x256xf32>
    tpu.vector_store %arg6[%c0_10, %c0_11], %10 {strides = array<i32>} : memref<4x256xf32, #tpu.memory_space<vmem>>, vector<4x256xf32>,
    return
  }
  func.func @transform_0(%arg0: i32) -> (i32, i32) {
    %c0_i32 = arith.constant 0 : i32
    %c0_i32_0 = arith.constant 0 : i32
    return %arg0, %c0_i32 : i32, i32
  }
  func.func @transform_1(%arg0: i32) -> (i32, i32) {
    %c0_i32 = arith.constant 0 : i32
    %c0_i32_0 = arith.constant 0 : i32
    return %arg0, %c0_i32 : i32, i32
  }
  func.func @transform_2(%arg0: i32) -> (i32, i32) {
    %c0_i32 = arith.constant 0 : i32
    %c0_i32_0 = arith.constant 0 : i32
    %c0_i32_1 = arith.constant 0 : i32
    return %c0_i32, %c0_i32_0 : i32, i32
  }
  func.func @transform_3(%arg0: i32) -> (i32, i32) {
    %c0_i32 = arith.constant 0 : i32
    %c0_i32_0 = arith.constant 0 : i32
    %c0_i32_1 = arith.constant 0 : i32
    return %c0_i32, %c0_i32_0 : i32, i32
  }
  func.func @transform_4(%arg0: i32) -> (i32, i32) {
    %c0_i32 = arith.constant 0 : i32
    %c0_i32_0 = arith.constant 0 : i32
    %c0_i32_1 = arith.constant 0 : i32
    return %c0_i32, %c0_i32_0 : i32, i32
  }
  func.func @transform_5(%arg0: i32) -> (i32, i32) {
    %c0_i32 = arith.constant 0 : i32
    %c0_i32_0 = arith.constant 0 : i32
    return %c0_i32, %arg0 : i32, i32
  }
}

</mosaic_0001>

<bundles_post_ra>
// kernel: dynamics_log_weight.1
= control target key start
LH: loop header
LB: loop body
LE: loop exit
PB: predicated region body
PF: predicated region fallthrough
CT: control target
= control target key end

     0   :  { %s1093_s2 = inlined_call_operand.vmem [shape: f32[128,128], index: 2, kind: input, shape index: {}]   ;;  %s1094_s0 = inlined_call_operand.vmem [shape: f32[256,128], index: 0, kind: input, shape index: {}]   ;;  %s1095_s4 = inlined_call_operand.vmem [shape: f32[4,128], index: 4, kind: input, shape index: {}]   ;;  %s1096_s3 = inlined_call_operand.vmem [shape: f32[1,128], index: 3, kind: input, shape index: {}]   ;;  %s1097_s1 = inlined_call_operand.vmem [shape: f32[256,128], index: 1, kind: input, shape index: {}]   ;;  %s1098_s5 = inlined_call_operand.vmem [shape: f32[4,256], index: 5, kind: output, shape index: {}]  }
   0x1   :  { %v84_v0 = vld [vmem:[%s1093_s2] sm:$0xff]  ;;  %v85_v1 = vld [vmem:[%s1093_s2 + $0x8] sm:$0xff]  ;;  %v86_v2 = vld [vmem:[%s1093_s2 + $0x10] sm:$0xff] }
   0x2   :  { %v640_v3 = vpack.c.bf16 %v85_v1, %v84_v0  ;;  %v87_v4 = vld [vmem:[%s1093_s2 + $0x18] sm:$0xff]  ;;  %v88_v6 = vld [vmem:[%s1093_s2 + $0x20] sm:$0xff]  ;;  %v89_v7 = vld [vmem:[%s1093_s2 + $0x28] sm:$0xff] }
   0x3   :  { %v644_v5 = vpack.c.bf16 %v87_v4, %v86_v2  ;;  %v648_v8 = vpack.c.bf16 %v89_v7, %v88_v6  ;;  %v20_v9 = vld [vmem:[%s1094_s0] sm:$0xff]  ;;  %v90_v10 = vld [vmem:[%s1093_s2 + $0x30] sm:$0xff]  ;;  %v91_v11 = vld [vmem:[%s1093_s2 + $0x38] sm:$0xff] }
   0x4   :  { %641 = vmatprep.subr.bf16.mxu0 %v640_v3  ;;  %592 = vmatprep.mubr.f32.mxu0 %v20_v9  ;;  %v652_v12 = vpack.c.bf16 %v91_v11, %v90_v10  ;;  %v92_v13 = vld [vmem:[%s1093_s2 + $0x40] sm:$0xff]  ;;  %v93_v14 = vld [vmem:[%s1093_s2 + $0x48] sm:$0xff]  ;;  %v94_v16 = vld [vmem:[%s1093_s2 + $0x50] sm:$0xff] }
   0x5   :  { %643 = vmatpush3.bf16.msra.mxu0 %v640_v3  ;;  %v656_v15 = vpack.c.bf16 %v93_v14, %v92_v13  ;;  %v95_v17 = vld [vmem:[%s1093_s2 + $0x58] sm:$0xff]  ;;  %v96_v19 = vld [vmem:[%s1093_s2 + $0x60] sm:$0xff]  ;;  %v97_v20 = vld [vmem:[%s1093_s2 + $0x68] sm:$0xff] }
   0x6   :  { %645 = vmatprep.subr.bf16.mxu0 %v644_v5  ;;  %v660_v18 = vpack.c.bf16 %v95_v17, %v94_v16  ;;  %v664_v21 = vpack.c.bf16 %v97_v20, %v96_v19  ;;  %v98_v22 = vld [vmem:[%s1093_s2 + $0x70] sm:$0xff]  ;;  %v99_v23 = vld [vmem:[%s1093_s2 + $0x78] sm:$0xff]  ;;  %v21_v25 = vld [vmem:[%s1094_s0 + $0x8] sm:$0xff] }
   0x7   :  { %v668_v24 = vpack.c.bf16 %v99_v23, %v98_v22  ;;  %v22_v26 = vld [vmem:[%s1094_s0 + $0x10] sm:$0xff]  ;;  %v23_v27 = vld [vmem:[%s1094_s0 + $0x18] sm:$0xff]  ;;  %v24_v28 = vld [vmem:[%s1094_s0 + $0x20] sm:$0xff] }
   0x8   :  { %v25_v29 = vld [vmem:[%s1094_s0 + $0x28] sm:$0xff]  ;;  %v26_v30 = vld [vmem:[%s1094_s0 + $0x30] sm:$0xff]  ;;  %v27_v31 = vld [vmem:[%s1094_s0 + $0x38] sm:$0xff] }
   0x9   :  { %647 = vmatpush3.bf16.msra.mxu0 %v644_v5  ;;  %v28_v32 = vld [vmem:[%s1094_s0 + $0x40] sm:$0xff]  ;;  %v29_v33 = vld [vmem:[%s1094_s0 + $0x48] sm:$0xff]  ;;  %v30_v34 = vld [vmem:[%s1094_s0 + $0x50] sm:$0xff] }
   0xa   :  { %649 = vmatprep.subr.bf16.mxu0 %v648_v8  ;;  %v31_v35 = vld [vmem:[%s1094_s0 + $0x58] sm:$0xff]  ;;  %v32_v36 = vld [vmem:[%s1094_s0 + $0x60] sm:$0xff]  ;;  %v33_v37 = vld [vmem:[%s1094_s0 + $0x68] sm:$0xff] }
   0xb   :  { %v34_v38 = vld [vmem:[%s1094_s0 + $0x70] sm:$0xff]  ;;  %v35_v39 = vld [vmem:[%s1094_s0 + $0x78] sm:$0xff]  ;;  %v36_v40 = vld [vmem:[%s1094_s0 + $0x80] sm:$0xff] }
   0xc   :  { %v37_v41 = vld [vmem:[%s1094_s0 + $0x88] sm:$0xff]  ;;  %v38_v42 = vld [vmem:[%s1094_s0 + $0x90] sm:$0xff]  ;;  %v39_v43 = vld [vmem:[%s1094_s0 + $0x98] sm:$0xff] }
   0xd   :  { %651 = vmatpush3.bf16.msra.mxu0 %v648_v8  ;;  %v40_v44 = vld [vmem:[%s1094_s0 + $0xa0] sm:$0xff]  ;;  %v41_v45 = vld [vmem:[%s1094_s0 + $0xa8] sm:$0xff]  ;;  %v42_v46 = vld [vmem:[%s1094_s0 + $0xb0] sm:$0xff] }
   0xe   :  { %653 = vmatprep.subr.bf16.mxu0 %v652_v12  ;;  %v43_v47 = vld [vmem:[%s1094_s0 + $0xb8] sm:$0xff]  ;;  %v44_v48 = vld [vmem:[%s1094_s0 + $0xc0] sm:$0xff]  ;;  %v45_v49 = vld [vmem:[%s1094_s0 + $0xc8] sm:$0xff] }
   0xf   :  { %v46_v50 = vld [vmem:[%s1094_s0 + $0xd0] sm:$0xff]  ;;  %v47_v51 = vld [vmem:[%s1094_s0 + $0xd8] sm:$0xff]  ;;  %v48_v52 = vld [vmem:[%s1094_s0 + $0xe0] sm:$0xff] }
  0x10   :  { %v49_v53 = vld [vmem:[%s1094_s0 + $0xe8] sm:$0xff]  ;;  %v50_v54 = vld [vmem:[%s1094_s0 + $0xf0] sm:$0xff]  ;;  %v51_v55 = vld [vmem:[%s1094_s0 + $0xf8] sm:$0xff] }
  0x11   :  { %655 = vmatpush3.bf16.msra.mxu0 %v652_v12  ;;  %v881_v56 = vld [vmem:[%s1095_s4] sm:$0xf]  ;;  %v53_v58 = vld [vmem:[%s1097_s1 + $0x8] sm:$0xff]  ;;  %v55_v2 = vld [vmem:[%s1097_s1 + $0x18] sm:$0xff] }
  0x12   :  { %657 = vmatprep.subr.bf16.mxu0 %v656_v15  ;;  %558 = vmatprep.mubr.f32.mxu1 %v881_v56  ;;  %v887_v57 = vld [vmem:[%s1096_s3] ss:$0 sm:$0xff]  ;;  %v54_v6 = vld [vmem:[%s1097_s1 + $0x10] sm:$0xff]  ;;  %v57_v12 = vld [vmem:[%s1097_s1 + $0x28] sm:$0xff] }
  0x13   :  { %v52_v61 = vld [vmem:[%s1097_s1] sm:$0xff]  ;;  %v59_v23 = vld [vmem:[%s1097_s1 + $0x38] sm:$0xff] }
  0x14   :  { %v56_v17 = vld [vmem:[%s1097_s1 + $0x20] sm:$0xff] }
  0x15   :  { %659 = vmatpush3.bf16.msra.mxu0 %v656_v15 }
  0x16   :  { %661 = vmatprep.subr.bf16.mxu0 %v660_v18 }
  0x19   :  { %663 = vmatpush3.bf16.msra.mxu0 %v660_v18 }
  0x1a   :  { %665 = vmatprep.subr.bf16.mxu0 %v664_v21 }
  0x1d   :  { %667 = vmatpush3.bf16.msra.mxu0 %v664_v21 }
  0x1e   :  { %669 = vmatprep.subr.bf16.mxu0 %v668_v24 }
  0x21   :  { %671 = vmatpush3.bf16.msra.mxu0 %v668_v24 }
  0x24   :  { %593 = vmatmul.mubr.f32.vlgmr.msra.gmra.mrb[0].mxu0 %v21_v25 }
  0x25   :  { %595 = vmatprep.mubr.f32.mxu0 %v22_v26 }
  0x28   :  { %596 = vmatmul.mubr.f32.gmra.mrb[2].mxu0 %v23_v27 }
  0x29   :  { %598 = vmatprep.mubr.f32.mxu0 %v24_v28  ;;  %v58_v28 = vld [vmem:[%s1097_s1 + $0x30] sm:$0xff] }
  0x2c   :  { %599 = vmatmul.mubr.f32.gmra.mrb[4].mxu0 %v25_v29 }
  0x2d   :  { %601 = vmatprep.mubr.f32.mxu0 %v26_v30 }
  0x30   :  { %602 = vmatmul.mubr.f32.gmra.mrb[6].mxu0 %v27_v31 }
  0x31   :  { %604 = vmatprep.mubr.f32.mxu0 %v28_v32 }
  0x34   :  { %605 = vmatmul.mubr.f32.gmra.mrb[8].mxu0 %v29_v33 }
  0x35   :  { %607 = vmatprep.mubr.f32.mxu0 %v30_v34  ;;  %v61_v34 = vld [vmem:[%s1097_s1 + $0x48] sm:$0xff] }
  0x38   :  { %608 = vmatmul.mubr.f32.gmra.mrb[10].mxu0 %v31_v35 }
  0x39   :  { %610 = vmatprep.mubr.f32.mxu0 %v32_v36 }
  0x3c   :  { %611 = vmatmul.mubr.f32.gmra.mrb[12].mxu0 %v33_v37 }
  0x3d   :  { %613 = vmatprep.mubr.f32.mxu0 %v34_v38 }
  0x40   :  { %614 = vmatmul.mubr.f32.gmra.mrb[14].mxu0 %v35_v39  ;;  %v60_v39 = vld [vmem:[%s1097_s1 + $0x40] sm:$0xff] }
  0x41   :  { %616 = vmatprep.mubr.f32.mxu0 %v36_v40 }
  0x44   :  { %617 = vmatmul.mubr.f32.gmra.mrb[16].mxu0 %v37_v41 }
  0x45   :  { %619 = vmatprep.mubr.f32.mxu0 %v38_v42 }
  0x48   :  { %620 = vmatmul.mubr.f32.gmra.mrb[18].mxu0 %v39_v43 }
  0x49   :  { %622 = vmatprep.mubr.f32.mxu0 %v40_v44 }
  0x4c   :  { %623 = vmatmul.mubr.f32.gmra.mrb[20].mxu0 %v41_v45  ;;  %v63_v45 = vld [vmem:[%s1097_s1 + $0x58] sm:$0xff] }
  0x4d   :  { %625 = vmatprep.mubr.f32.mxu0 %v42_v46 }
  0x50   :  { %626 = vmatmul.mubr.f32.gmra.mrb[22].mxu0 %v43_v47 }
  0x51   :  { %628 = vmatprep.mubr.f32.mxu0 %v44_v48 }
  0x54   :  { %629 = vmatmul.mubr.f32.gmra.mrb[24].mxu0 %v45_v49 }
  0x55   :  { %631 = vmatprep.mubr.f32.mxu0 %v46_v50  ;;  %v62_v50 = vld [vmem:[%s1097_s1 + $0x50] sm:$0xff] }
  0x58   :  { %632 = vmatmul.mubr.f32.gmra.mrb[26].mxu0 %v47_v51 }
  0x59   :  { %634 = vmatprep.mubr.f32.mxu0 %v48_v52 }
  0x5c   :  { %635 = vmatmul.mubr.f32.gmra.mrb[28].mxu0 %v49_v53 }
  0x5d   :  { %637 = vmatprep.mubr.f32.mxu0 %v50_v54 }
  0x60   :  { %638 = vmatmul.mubr.f32.gmra.mrb[30].mxu0 %v51_v55 }
  0xf7   :  { %v594_v59 = vpop.f32.mrb[0].mxu0 }
  0xf8   :  { %v179_v60 = vadd.f32 %v594_v59, %v887_v57  ;;  %v173_v62 = vpop.f32.mrb[1].mxu0 }
  0xf9   :  { %v174_v63 = vadd.f32 %v887_v57, %v173_v62 }
  0xfa   :  { %v333_v0 = vsub.f32 %v53_v58, %v179_v60  ;;  %v65_v58 = vld [vmem:[%s1097_s1 + $0x68] sm:$0xff] }
  0xfb   :  { %v332_v1 = vsub.f32 %v52_v61, %v174_v63  ;;  %v597_v3 = vpop.f32.mrb[2].mxu0  ;;  %v64_v63 = vld [vmem:[%s1097_s1 + $0x60] sm:$0xff] }
  0xfc   :  { %v900_v4 = vmul.f32 %v333_v0, %v333_v0  ;;  %v189_v5 = vadd.f32 %v597_v3, %v887_v57  ;;  %v183_v7 = vpop.f32.mrb[3].mxu0 }
  0xfd   :  { %v906_v8 = vmul.f32 %v332_v1, %v332_v1  ;;  %v184_v9 = vadd.f32 %v887_v57, %v183_v7 }
  0xfe   :  { %v335_v10 = vsub.f32 %v55_v2, %v189_v5 }
  0xff   :  { %v334_v11 = vsub.f32 %v54_v6, %v184_v9  ;;  %v600_v13 = vpop.f32.mrb[4].mxu0  ;;  %v674_v14 = vpack.c.bf16 %v900_v4, %v906_v8  ;;  %v67_v6 = vld [vmem:[%s1097_s1 + $0x78] sm:$0xff] }
 0x100   :  { %v914_v15 = vmul.f32 %v335_v10, %v335_v10  ;;  %v199_v16 = vadd.f32 %v600_v13, %v887_v57  ;;  %v193_v18 = vpop.f32.mrb[5].mxu0 }
 0x101   :  { %v920_v19 = vmul.f32 %v334_v11, %v334_v11  ;;  %v194_v20 = vadd.f32 %v887_v57, %v193_v18 }
 0x102   :  { %v337_v21 = vsub.f32 %v57_v12, %v199_v16  ;;  %v66_v12 = vld [vmem:[%s1097_s1 + $0x70] sm:$0xff] }
 0x103   :  { %v336_v22 = vsub.f32 %v56_v17, %v194_v20  ;;  %v603_v24 = vpop.f32.mrb[6].mxu0  ;;  %v678_v25 = vpack.c.bf16 %v914_v15, %v920_v19 }
 0x104   :  { %v928_v26 = vmul.f32 %v337_v21, %v337_v21  ;;  %v209_v27 = vadd.f32 %v603_v24, %v887_v57  ;;  %v203_v29 = vpop.f32.mrb[7].mxu0 }
 0x105   :  { %v934_v30 = vmul.f32 %v336_v22, %v336_v22  ;;  %v204_v31 = vadd.f32 %v887_v57, %v203_v29  ;;  %v69_v22 = vld [vmem:[%s1097_s1 + $0x88] sm:$0xff]  ;;  %v68_v29 = vld [vmem:[%s1097_s1 + $0x80] sm:$0xff] }
 0x106   :  { %v339_v32 = vsub.f32 %v59_v23, %v209_v27 }
 0x107   :  { %v338_v33 = vsub.f32 %v58_v28, %v204_v31  ;;  %v606_v35 = vpop.f32.mrb[8].mxu0  ;;  %v682_v36 = vpack.c.bf16 %v928_v26, %v934_v30 }
 0x108   :  { %v942_v37 = vmul.f32 %v339_v32, %v339_v32  ;;  %v219_v38 = vadd.f32 %v606_v35, %v887_v57  ;;  %v213_v40 = vpop.f32.mrb[9].mxu0 }
 0x109   :  { %v948_v41 = vmul.f32 %v338_v33, %v338_v33  ;;  %v214_v42 = vadd.f32 %v887_v57, %v213_v40 }
 0x10a   :  { %v341_v43 = vsub.f32 %v61_v34, %v219_v38  ;;  %v71_v34 = vld [vmem:[%s1097_s1 + $0x98] sm:$0xff] }
 0x10b   :  { %v340_v44 = vsub.f32 %v60_v39, %v214_v42  ;;  %v609_v46 = vpop.f32.mrb[10].mxu0  ;;  %v686_v47 = vpack.c.bf16 %v942_v37, %v948_v41  ;;  %v70_v42 = vld [vmem:[%s1097_s1 + $0x90] sm:$0xff] }
 0x10c   :  { %v956_v48 = vmul.f32 %v341_v43, %v341_v43  ;;  %v229_v49 = vadd.f32 %v609_v46, %v887_v57  ;;  %v223_v51 = vpop.f32.mrb[11].mxu0 }
 0x10d   :  { %v962_v52 = vmul.f32 %v340_v44, %v340_v44  ;;  %v224_v53 = vadd.f32 %v887_v57, %v223_v51 }
 0x10e   :  { %v343_v54 = vsub.f32 %v63_v45, %v229_v49 }
 0x10f   :  { %v342_v55 = vsub.f32 %v62_v50, %v224_v53  ;;  %v612_v59 = vpop.f32.mrb[12].mxu0  ;;  %v690_v60 = vpack.c.bf16 %v956_v48, %v962_v52  ;;  %v73_v53 = vld [vmem:[%s1097_s1 + $0xa8] sm:$0xff] }
 0x110   :  { %v970_v61 = vmul.f32 %v343_v54, %v343_v54  ;;  %v239_v62 = vadd.f32 %v612_v59, %v887_v57  ;;  %v233_v0 = vpop.f32.mrb[13].mxu0  ;;  %v72_v59 = vld [vmem:[%s1097_s1 + $0xa0] sm:$0xff] }
 0x111   :  { %v976_v1 = vmul.f32 %v342_v55, %v342_v55  ;;  %v234_v2 = vadd.f32 %v887_v57, %v233_v0 }
 0x112   :  { %v345_v3 = vsub.f32 %v65_v58, %v239_v62 }
 0x113   :  { %v344_v5 = vsub.f32 %v64_v63, %v234_v2  ;;  %v615_v7 = vpop.f32.mrb[14].mxu0  ;;  %v694_v9 = vpack.c.bf16 %v970_v61, %v976_v1 }
 0x114   :  { %v984_v10 = vmul.f32 %v345_v3, %v345_v3  ;;  %v249_v11 = vadd.f32 %v615_v7, %v887_v57  ;;  %v243_v13 = vpop.f32.mrb[15].mxu0 }
 0x115   :  { %v990_v16 = vmul.f32 %v344_v5, %v344_v5  ;;  %v244_v17 = vadd.f32 %v887_v57, %v243_v13  ;;  %v74_v13 = vld [vmem:[%s1097_s1 + $0xb0] sm:$0xff] }
 0x116   :  { %v347_v18 = vsub.f32 %v67_v6, %v249_v11  ;;  %v75_v6 = vld [vmem:[%s1097_s1 + $0xb8] sm:$0xff] }
 0x117   :  { %v346_v20 = vsub.f32 %v66_v12, %v244_v17  ;;  %v618_v21 = vpop.f32.mrb[16].mxu0  ;;  %v698_v23 = vpack.c.bf16 %v984_v10, %v990_v16 }
 0x118   :  { %v998_v24 = vmul.f32 %v347_v18, %v347_v18  ;;  %v259_v27 = vadd.f32 %v618_v21, %v887_v57  ;;  %v253_v28 = vpop.f32.mrb[17].mxu0  ;;  %v77_v21 = vld [vmem:[%s1097_s1 + $0xc8] sm:$0xff] }
 0x119   :  { %v1004_v31 = vmul.f32 %v346_v20, %v346_v20  ;;  %v254_v32 = vadd.f32 %v887_v57, %v253_v28 }
 0x11a   :  { %v349_v33 = vsub.f32 %v69_v22, %v259_v27 }
 0x11b   :  { %v621_v35 = vpop.f32.mrb[18].mxu0  ;;  %v348_v38 = vsub.f32 %v68_v29, %v254_v32  ;;  %v702_v39 = vpack.c.bf16 %v998_v24, %v1004_v31  ;;  %v76_v29 = vld [vmem:[%s1097_s1 + $0xc0] sm:$0xff] }
 0x11c   :  { %v269_v40 = vadd.f32 %v621_v35, %v887_v57  ;;  %v263_v43 = vpop.f32.mrb[19].mxu0  ;;  %v381_v44 = vmul.f32 %v349_v33, %v349_v33 }
 0x11d   :  { %v264_v45 = vadd.f32 %v887_v57, %v263_v43  ;;  %v380_v46 = vmul.f32 %v348_v38, %v348_v38 }
 0x11e   :  { %v351_v49 = vsub.f32 %v71_v34, %v269_v40 }
 0x11f   :  { %v350_v50 = vsub.f32 %v70_v42, %v264_v45  ;;  %v672_v51 = vpack.c.bf16 %v381_v44, %v380_v46  ;;  %v624_v54 = vpop.f32.mrb[20].mxu0  ;;  %v79_v42 = vld [vmem:[%s1097_s1 + $0xd8] sm:$0xff]  ;;  %v78_v46 = vld [vmem:[%s1097_s1 + $0xd0] sm:$0xff] }
 0x120   :  { %v383_v55 = vmul.f32 %v351_v49, %v351_v49  ;;  %v279_v58 = vadd.f32 %v624_v54, %v887_v57  ;;  %v273_v62 = vpop.f32.mrb[21].mxu0 }
 0x121   :  { %v382_v63 = vmul.f32 %v350_v50, %v350_v50  ;;  %673 = vmatprep.subr.bf16.mxu1 %v672_v51  ;;  %v274_v0 = vadd.f32 %v887_v57, %v273_v62 }
 0x122   :  { %675 = vmatpush3.bf16.xpose.msra.mxu1 %v674_v14  ;;  %v353_v2 = vsub.f32 %v73_v53, %v279_v58  ;;  %v81_v53 = vld [vmem:[%s1097_s1 + $0xe8] sm:$0xff] }
 0x123   :  { %v352_v3 = vsub.f32 %v72_v59, %v274_v0  ;;  %v676_v5 = vpack.c.bf16 %v383_v55, %v382_v63  ;;  %v627_v7 = vpop.f32.mrb[22].mxu0  ;;  %v80_v59 = vld [vmem:[%s1097_s1 + $0xe0] sm:$0xff] }
 0x124   :  { %v385_v11 = vmul.f32 %v353_v2, %v353_v2  ;;  %v289_v12 = vadd.f32 %v627_v7, %v887_v57  ;;  %v283_v17 = vpop.f32.mrb[23].mxu0 }
 0x125   :  { %v384_v18 = vmul.f32 %v352_v3, %v352_v3  ;;  %677 = vmatprep.subr.bf16.mxu1 %v676_v5  ;;  %v284_v4 = vadd.f32 %v887_v57, %v283_v17 }
 0x126   :  { %v355_v8 = vsub.f32 %v75_v6, %v289_v12  ;;  %v83_v6 = vld [vmem:[%s1097_s1 + $0xf8] sm:$0xff] }
 0x127   :  { %v354_v14 = vsub.f32 %v74_v13, %v284_v4  ;;  %v680_v20 = vpack.c.bf16 %v385_v11, %v384_v18  ;;  %v630_v22 = vpop.f32.mrb[24].mxu0  ;;  %v82_v13 = vld [vmem:[%s1097_s1 + $0xf0] sm:$0xff] }
 0x128   :  { %v387_v27 = vmul.f32 %v355_v8, %v355_v8  ;;  %v299_v28 = vadd.f32 %v630_v22, %v887_v57  ;;  %v293_v32 = vpop.f32.mrb[25].mxu0 }
 0x129   :  { %v386_v33 = vmul.f32 %v354_v14, %v354_v14  ;;  %v294_v34 = vadd.f32 %v887_v57, %v293_v32 }
 0x12a   :  { %679 = vmatpush3.bf16.xpose.msra.mxu1 %v678_v25  ;;  %v357_v35 = vsub.f32 %v77_v21, %v299_v28 }
 0x12b   :  { %681 = vmatprep.subr.bf16.mxu1 %v680_v20  ;;  %v356_v38 = vsub.f32 %v76_v29, %v294_v34  ;;  %v684_v40 = vpack.c.bf16 %v387_v27, %v386_v33  ;;  %v633_v43 = vpop.f32.mrb[26].mxu0 }
 0x12c   :  { %v389_v44 = vmul.f32 %v357_v35, %v357_v35  ;;  %v309_v45 = vadd.f32 %v633_v43, %v887_v57  ;;  %v303_v49 = vpop.f32.mrb[27].mxu0 }
 0x12d   :  { %v388_v50 = vmul.f32 %v356_v38, %v356_v38  ;;  %v304_v15 = vadd.f32 %v887_v57, %v303_v49 }
 0x12e   :  { %v359_v19 = vsub.f32 %v79_v42, %v309_v45 }
 0x12f   :  { %v358_v25 = vsub.f32 %v78_v46, %v304_v15  ;;  %v688_v51 = vpack.c.bf16 %v389_v44, %v388_v50  ;;  %v636_v54 = vpop.f32.mrb[28].mxu0 }
 0x130   :  { %v391_v55 = vmul.f32 %v359_v19, %v359_v19  ;;  %v319_v58 = vadd.f32 %v636_v54, %v887_v57  ;;  %v313_v62 = vpop.f32.mrb[29].mxu0 }
 0x131   :  { %v390_v63 = vmul.f32 %v358_v25, %v358_v25  ;;  %v314_v0 = vadd.f32 %v887_v57, %v313_v62 }
 0x132   :  { %683 = vmatpush3.bf16.xpose.msra.mxu1 %v682_v36  ;;  %v361_v2 = vsub.f32 %v81_v53, %v319_v58 }
 0x133   :  { %685 = vmatprep.subr.bf16.mxu1 %v684_v40  ;;  %v360_v3 = vsub.f32 %v80_v59, %v314_v0  ;;  %v692_v5 = vpack.c.bf16 %v391_v55, %v390_v63  ;;  %v639_v7 = vpop.f32.mrb[30].mxu0 }
 0x134   :  { %v393_v11 = vmul.f32 %v361_v2, %v361_v2  ;;  %v329_v12 = vadd.f32 %v639_v7, %v887_v57  ;;  %v323_v17 = vpop.f32.mrb[31].mxu0 }
 0x135   :  { %v392_v18 = vmul.f32 %v360_v3, %v360_v3  ;;  %v324_v26 = vadd.f32 %v887_v57, %v323_v17 }
 0x136   :  { %v363_v30 = vsub.f32 %v83_v6, %v329_v12 }
 0x137   :  { %v362_v36 = vsub.f32 %v82_v13, %v324_v26  ;;  %v696_v4 = vpack.c.bf16 %v393_v11, %v392_v18 }
 0x138   :  { %v395_v8 = vmul.f32 %v363_v30, %v363_v30 }
 0x139   :  { %v394_v14 = vmul.f32 %v362_v36, %v362_v36 }
 0x13a   :  { %687 = vmatpush3.bf16.xpose.msra.mxu1 %v686_v47 }
 0x13b   :  { %689 = vmatprep.subr.bf16.mxu1 %v688_v51  ;;  %v700_v20 = vpack.c.bf16 %v395_v8, %v394_v14 }
 0x142   :  { %691 = vmatpush3.bf16.xpose.msra.mxu1 %v690_v60 }
 0x143   :  { %693 = vmatprep.subr.bf16.mxu1 %v692_v5 }
 0x14a   :  { %695 = vmatpush3.bf16.xpose.msra.mxu1 %v694_v9 }
 0x14b   :  { %697 = vmatprep.subr.bf16.mxu1 %v696_v4 }
 0x152   :  { %699 = vmatpush3.bf16.xpose.msra.mxu1 %v698_v23 }
 0x153   :  { %701 = vmatprep.subr.bf16.mxu1 %v700_v20 }
 0x15a   :  { %703 = vmatpush3.bf16.xpose.msra.mxu1 %v702_v39 }
 0x161   :  { %559 = vmatmul.mubr.f32.vlgmr.msra.gmra.mrb[0].mxu1 %v881_v56 }
 0x234   :  { %v463_v57 = vpop.f32.mrb[0].mxu1 }
 0x235   :  { %v465_v37 = vpop.f32.mrb[1].mxu1 }
 0x236   :  { %v470_v41 = vcombine.low %v463_v57, %v465_v37 }
 0x238   :  { %472 = vst [vmem:[%s1098_s5] sm:$0xff] %v470_v41 }

</bundles_post_ra>
